<compile_context>
chip_gen: v7x
topology: tpu7x:2x2x1
jax: 0.10.0
libtpu: 0.0.40
codegen_flags: <defaults>
</compile_context>

<pallas_src>
import functools
import math

import jax
import jax.numpy as jnp
from jax.experimental import pallas as pl
from jax.experimental.pallas import tpu as pltpu


def _round_up(v, m):
    return ((v + m - 1) // m) * m


def _pool_one(w, xb, mask):
    """w: (n_classes, C_in), xb: (C_in, THW) -> (n_classes, 1) f32 max over the tile."""
    feats = jnp.dot(w, xb, preferred_element_type=jnp.float32)   # (n_classes, THW) f32
    if mask is not None:
        feats = jnp.where(mask, feats, -jnp.inf)
    return jnp.max(feats, axis=-1, keepdims=True)                # (n_classes, 1)


def _head_kernel(x_ref, w_ref, o_ref, *, thw, hw_total, multi_hw):
    """One grid step.

    x_ref: (Nb, C_in, THW)    -- Nb fused batch elements, one spatial tile (native dtype)
    w_ref: (n_classes, C_in)  -- 1x1 conv weight, constant block (stays resident)
    o_ref: (1, n_classes, Nb) -- f32 pooled output (running max when multi_hw)
    """
    w = w_ref[...]
    nb = x_ref.shape[0]
    n_cls = o_ref.shape[1]

    if not multi_hw:
        # Fast path: whole HW extent is in this block. No init, no accumulator RMW, no mask.
        if nb == 1:
            o_ref[...] = _pool_one(w, x_ref[0], None)[None]
        else:
            lane = jax.lax.broadcasted_iota(jnp.int32, (n_cls, nb), 1)

            def body(b, acc):
                col = _pool_one(w, x_ref[b], None)               # (n_classes, 1)
                return jnp.where(lane == b, col, acc)            # place in lane b

            pooled = jax.lax.fori_loop(0, nb, body,
                                       jnp.zeros((n_cls, nb), jnp.float32),
                                       unroll=True)
            o_ref[...] = pooled[None]
    else:
        # Accumulating path: Nb == 1 by construction, HW tiled along grid axis 1 ("arbitrary").
        hw_i = pl.program_id(1)

        @pl.when(hw_i == 0)
        def _init():
            o_ref[...] = jnp.full_like(o_ref, -jnp.inf)

        mask = None
        if (hw_total % thw) != 0:                                # static: only if ragged tail
            lane = jax.lax.broadcasted_iota(jnp.int32, (n_cls, thw), 1)
            mask = hw_i * thw + lane < hw_total

        col = _pool_one(w, x_ref[0], mask)                       # (n_classes, 1)
        o_ref[...] = jnp.maximum(o_ref[...], col[None])


def _vmem_budget():
    """(per-step block budget, scoped vmem_limit_bytes), conservative per TPU generation."""
    try:
        cap = getattr(pltpu.get_tpu_info(), "vmem_capacity_bytes", None)
    except Exception:
        cap = None
    if cap is None:
        cap = 64 << 20                        # assume v7x-class (smallest VMEM) if unknown
    if cap <= (64 << 20):                     # v7x: 64 MiB per TC -> stay small
        return 8 << 20, 32 << 20
    return 16 << 20, 64 << 20                 # v5e / v6e: 128 MiB -> bigger blocks


def _choose_tiles(n, c_in, hw, n_classes, itemsize, budget, *, max_nb=8):
    """Pick (Nb, THW). Prefer full-HW blocks (shrink Nb first); only tile HW when a single-batch
    full-HW block still exceeds the budget. Budget counts sublane padding, double buffering of
    the x block, and the f32 (n_classes, THW) matmul intermediate."""
    sub = max(8, 32 // itemsize)              # sublane tile: 8 f32, 16 bf16, 32 int8
    c_pad = _round_up(c_in, sub)
    ncls_pad = _round_up(n_classes, 8)

    def footprint(nb, thw):
        thw_pad = _round_up(thw, 128)
        x_blk = nb * c_pad * thw_pad * itemsize          # one x buffer
        feats = ncls_pad * thw_pad * 4                   # one live f32 matmul result
        w_blk = ncls_pad * c_pad * itemsize
        o_blk = ncls_pad * _round_up(nb, 128) * 4
        return 2 * x_blk + feats + 2 * w_blk + 2 * o_blk  # x/w/o double-buffered

    # 1) Full-HW blocks; shrink the fused batch count before tiling HW.
    nb_cap = min(n, max_nb)
    if n >= 2:
        nb_cap = min(nb_cap, max(1, n // 2))  # keep >= 2 parallel grid steps (v7x: 2 TCs)
    for nb in range(nb_cap, 0, -1):
        if n % nb == 0 and footprint(nb, hw) <= budget:
            return nb, hw

    # 2) Nb == 1 still over budget: tile HW.
    if hw <= 512:
        return 1, hw                          # too small to tile legally/profitably
    per_lane = 2 * c_pad * itemsize + ncls_pad * 4
    fixed = 2 * ncls_pad * c_pad * itemsize + 2 * ncls_pad * 128 * 4
    cap = max(0, budget - fixed) // per_lane
    cap = max(512, (cap // 128) * 128)        # >= 512-lane floor for DMA efficiency
    cap = min(cap, (hw // 128) * 128)
    # Prefer a multiple-of-128 divisor of HW (no ragged tail -> no mask at all).
    d = cap
    while d >= 512:
        if hw % d == 0:
            return 1, d
        d -= 128
    return 1, cap                             # ragged tail handled with a -inf mask


def head_forward(x, weight, bias):
    """x: (N, C_in, H, W); weight: (n_classes, C_in) or (n_classes, C_in, 1, 1); bias: (n_classes,).
    Returns feats: (N, n_classes, 1, 1) = global_max_pool(Conv2d_1x1(x)), in x.dtype."""
    n, c_in, h, w_sp = x.shape
    if weight.ndim == 4:
        weight = weight.reshape(weight.shape[0], weight.shape[1])
    n_classes = weight.shape[0]
    hw = h * w_sp

    # No cast pass: consume x in its native dtype (contiguous reshape only, no layout change).
    x_c = x.reshape(n, c_in, hw)
    w_c = weight.astype(x.dtype)              # tiny; matmul dtype follows the input

    budget, vmem_limit = _vmem_budget()
    itemsize = jnp.dtype(x.dtype).itemsize
    nb, thw = _choose_tiles(n, c_in, hw, n_classes, itemsize, budget)
    multi_hw = thw < hw
    if multi_hw:
        nb = 1                                # accumulating path is single-batch per step
    n_tiles = n // nb
    hw_tiles = pl.cdiv(hw, thw)

    kernel = functools.partial(_head_kernel, thw=thw, hw_total=hw, multi_hw=multi_hw)

    if multi_hw:
        grid = (n_tiles, hw_tiles)
        in_specs = [
            pl.BlockSpec((nb, c_in, thw), lambda i, j: (i, 0, j)),
            pl.BlockSpec((n_classes, c_in), lambda i, j: (0, 0)),
        ]
        out_specs = pl.BlockSpec((1, n_classes, nb), lambda i, j: (i, 0, 0))
        dims = ("parallel", "arbitrary")
    else:
        grid = (n_tiles,)
        in_specs = [
            pl.BlockSpec((nb, c_in, hw), lambda i: (i, 0, 0)),
            pl.BlockSpec((n_classes, c_in), lambda i: (0, 0)),
        ]
        out_specs = pl.BlockSpec((1, n_classes, nb), lambda i: (i, 0, 0))
        dims = ("parallel",)

    out = pl.pallas_call(
        kernel,
        out_shape=jax.ShapeDtypeStruct((n_tiles, n_classes, nb), jnp.float32),
        grid_spec=pltpu.PrefetchScalarGridSpec(
            num_scalar_prefetch=0,
            grid=grid,
            in_specs=in_specs,
            out_specs=out_specs,
        ),
        compiler_params=pltpu.CompilerParams(
            dimension_semantics=dims,
            vmem_limit_bytes=vmem_limit,
        ),
    )(x_c, w_c)

    # (n_tiles, n_classes, nb) -> (N, n_classes); bias added AFTER the pool (exact).
    pooled = out.transpose(0, 2, 1).reshape(n, n_classes)
    pooled = pooled + bias.astype(jnp.float32)[None, :]
    return pooled.astype(x.dtype).reshape(n, n_classes, 1, 1)
    # TODO(synk): return_feats=False branch uses an undefined self.fc in the reference module.


if __name__ == "__main__":
    # Small shapes consistent with the module: batch=2, prev_channels=4, 16x16 spatial, 8 classes.
    N, C_in, H, W = 2, 4, 16, 16
    n_classes = 8

    key = jax.random.PRNGKey(0)
    kx, kw, kb = jax.random.split(key, 3)

    x = jax.random.normal(kx, (N, C_in, H, W), dtype=jnp.float32)
    bound = 1.0 / math.sqrt(C_in)
    weight = jax.random.uniform(kw, (n_classes, C_in), jnp.float32, -bound, bound)
    bias = jax.random.uniform(kb, (n_classes,), jnp.float32, -bound, bound)

    feats = jax.block_until_ready(head_forward(x, weight, bias))

    # f32 reference (kernel now computes in f32 — tolerances can be tight).
    ref = jnp.max(
        jnp.einsum("oc,nchw->nohw", weight, x) + bias[None, :, None, None],
        axis=(2, 3),
    ).reshape(N, n_classes, 1, 1)

    assert feats.shape == (N, n_classes, 1, 1)
    err = float(jnp.max(jnp.abs(feats.astype(jnp.float32) - ref)))
    assert err < 1e-4, err

    print("KERNEL_OK")
</pallas_src>

<mosaic_0001>
module attributes {stable_mosaic.version = 11 : i64} {
  func.func @_head_kernel(%arg0: i32, %arg1: memref<1x4x256xf32, #tpu.memory_space<vmem>>, %arg2: memref<8x4xf32, #tpu.memory_space<vmem>>, %arg3: memref<1x8x1xf32, #tpu.memory_space<vmem>>) attributes {dimension_semantics = [#tpu.dimension_semantics<parallel>], iteration_bounds = array<i64: 2>, scalar_prefetch = 0 : i64, scratch_operands = 0 : i64, tpu.core_type = #tpu.core_type<tc>, window_params = [{transform_indices = @transform_0, window_bounds = array<i64: 1, 4, 256>}, {pipeline_mode = #tpu.pipeline_mode<synchronous>, transform_indices = @transform_1, window_bounds = array<i64: 8, 4>}, {transform_indices = @transform_2, window_bounds = array<i64: 1, 8, 1>}]} {
    %c0 = arith.constant 0 : index
    %c0_0 = arith.constant 0 : index
    %0 = vector.load %arg2[%c0, %c0_0] : memref<8x4xf32, #tpu.memory_space<vmem>>, vector<8x4xf32>
    %c0_1 = arith.constant 0 : index
    %c0_2 = arith.constant 0 : index
    %c0_3 = arith.constant 0 : index
    %1 = vector.load %arg1[%c0_1, %c0_2, %c0_3] : memref<1x4x256xf32, #tpu.memory_space<vmem>>, vector<1x4x256xf32>
    %2 = vector.shape_cast %1 : vector<1x4x256xf32> to vector<4x256xf32>
    %cst = arith.constant dense<0.000000e+00> : vector<8x256xf32>
    %3 = tpu.matmul %0, %2, %cst {dimension_numbers = #tpu.dot_dimension_numbers<[1], [0], [0], [1], [0, 0, 1, 1], [], []>} : vector<8x4xf32>, vector<4x256xf32>, vector<8x256xf32> -> vector<8x256xf32>
    %cst_4 = arith.constant dense<0xFF800000> : vector<8xf32>
    %4 = vector.multi_reduction <maximumf>, %3, %cst_4 [1] : vector<8x256xf32> to vector<8xf32>
    %5 = vector.shape_cast %4 : vector<8xf32> to vector<8x1xf32>
    %6 = vector.shape_cast %5 : vector<8x1xf32> to vector<1x8x1xf32>
    %c0_5 = arith.constant 0 : index
    %c0_6 = arith.constant 0 : index
    %c0_7 = arith.constant 0 : index
    %7 = vector.load %arg3[%c0_5, %c0_6, %c0_7] : memref<1x8x1xf32, #tpu.memory_space<vmem>>, vector<1x8x1xf32>
    tpu.vector_store %arg3[%c0_5, %c0_6, %c0_7], %6 {strides = array<i32>} : memref<1x8x1xf32, #tpu.memory_space<vmem>>, vector<1x8x1xf32>,
    return
  }
  func.func @transform_0(%arg0: i32) -> (i32, i32, i32) {
    %c0_i32 = arith.constant 0 : i32
    %c0_i32_0 = arith.constant 0 : i32
    %c0_i32_1 = arith.constant 0 : i32
    return %arg0, %c0_i32, %c0_i32_0 : i32, i32, i32
  }
  func.func @transform_1(%arg0: i32) -> (i32, i32) {
    %c0_i32 = arith.constant 0 : i32
    %c0_i32_0 = arith.constant 0 : i32
    %c0_i32_1 = arith.constant 0 : i32
    return %c0_i32, %c0_i32_0 : i32, i32
  }
  func.func @transform_2(%arg0: i32) -> (i32, i32, i32) {
    %c0_i32 = arith.constant 0 : i32
    %c0_i32_0 = arith.constant 0 : i32
    %c0_i32_1 = arith.constant 0 : i32
    return %arg0, %c0_i32, %c0_i32_0 : i32, i32, i32
  }
}

</mosaic_0001>

<bundles_post_ra>
// kernel: tpu_custom_call.1
= control target key start
LH: loop header
LB: loop body
LE: loop exit
PB: predicated region body
PF: predicated region fallthrough
CT: control target
= control target key end

     0   :  { %7 = vsyncpa [#allocation3], 0  ;;  %s563_s0 = inlined_call_operand.hbm [shape: f32[2,4,256], index: 0, kind: input, shape index: {}]   ;;  %s564_s1 = inlined_call_operand.vmem [shape: f32[8,4], index: 1, kind: input, shape index: {}]   ;;  %s565_s2 = inlined_call_operand.vmem [shape: f32[2,8,1], index: 2, kind: output, shape index: {}]  }
   0x1   :  { %9 = vsyncpa [#allocation3 + $0x1], 0  ;;  %s453_s9 = smov 0   ;;  %s455_s10 = smov 0  }
   0x2   :  { %s457_s11 = smov 0   ;;  %s459_s12 = smov 0  }
   0x3 LB: > { %s472_s13 = sadd.s32 4294967295, %s434_s12   ;;  %s475_s14 = sadd.s32 1, %s434_s12   ;;  %s434_s12 = sphi %s459_s12, %s573_s12   ;;  %s430_s11 = sphi %s457_s11, %s572_s11   ;;  %s426_s10 = sphi %s455_s10, %s571_s10   ;;  %s422_s9 = sphi %s453_s9, %s570_s9  }
   0x4   : > { %s19_s15 = ssub.s32 %s434_s12, %s475_s14  ;;  %s22_s16 = sadd.s32 1, %s430_s11 }
   0x5   : > { %p20_p0 = scmp.eq.s32.totalorder %s19_s15, 0  ;;  %p29_p1 = scmp.ne.s32.totalorder %s430_s11, %s426_s10 }
   0x6   : > { %p30_p2 = scmp.eq.s32.totalorder %s434_s12, 0  ;;  %p35_p3 = scmp.ne.s32.totalorder %s426_s10, %s422_s9 }
   0x7   : > { %s485_s17 = scalar_select %p20_p0, %s430_s11, %s22_s16  }
   0x8   : > { %p31_p4 = por %p30_p2, %p29_p1  ;;  %p36_p5 = scmp.eq.s32.totalorder %s472_s13, 0 }
   0x9   : > { %p335_p6 = scmp.lt.s32.totalorder %s434_s12, 2  ;;  %s109_s19 = sand.u32 1, %s430_s11  }
   0xa   : > { %p489_p7 = por %p36_p5, %p35_p3  ;;  %s317_s20 = sshll.u32 %s109_s19, 3 }
   0xb   : > { %s328_s21 = sshll.u32 %s434_s12, 7  ;;  %s113_s25 = scalar_lea.vmem [#allocation2], %s317_s20 }
   0xc   : > { %s498_s24 = scalar_lea.hbm %s563_s0, %s328_s21  ;;  %s121_s26 = sshll.u32 %s113_s25, 4  ;;  %s500_s26 = int_to_ptr.vmem [resolvable:$true] %s121_s26 }
   0xd   : > { %p502_p8 = pnand %p335_p6, %p31_p4  ;;  %s110_s28 = scalar_lea.sflag [#allocation3], %s109_s19 }
   0xe   : > { %s370_s29 = scalar_lea.hbm %s498_s24, 128  ;;  %s375_s4 = scalar_lea.hbm %s563_s0, 256 }
   0xf   : > { %p371_p11 = scmp.ne.s32.totalorder %s498_s24, %s370_s29  ;;  %p372_p12 = pneg %p502_p8 }
  0x10   : > { %p376_p1 = scmp.lt.u32.totalorder %s498_s24, %s563_s0  ;;  %p377_p2 = scmp.lt.u32.totalorder %s375_s4, %s370_s29 }
  0x11   : > { %p373_p13 = pnand %p372_p12, %p371_p11  ;;  %p379_p4 = scmp.lt.u32.totalorder %s370_s29, %s498_s24 }
  0x12   : > { %p378_p3 = por %p377_p2, %p376_p1 }
  0x13   : > { %p374_p0 = pneg %p373_p13 }
  0x14   : > { %p380_p5 = por %p379_p4, %p378_p3 }
  0x16   : > { %p381_p6 = pnand %p380_p5, %p374_p0 }
  0x18   : > { %384 = shalt.err (!%p381_p6)
}
  0x19   : > { %s385_s7 = scalar_lea.vmem %s500_s26, 128  ;;  %s436_s8 = smov [#allocation2]  }
  0x1a   : > { %p386_p11 = scmp.ne.s32.totalorder %s500_s26, %s385_s7  ;;  %s390_s9 = sshll.u32 %s436_s8, 4  ;;  %s391_s9 = int_to_ptr.vmem [resolvable:$false] %s390_s9 }
  0x1b   : > { %s392_s15 = scalar_lea.vmem %s391_s9, 256  ;;  %p393_p10 = scmp.lt.s32.totalorder %s500_s26, %s391_s9 }
  0x1c   : > { %p388_p13 = pnand %p386_p11, %p372_p12  ;;  %p394_p1 = scmp.lt.s32.totalorder %s392_s15, %s385_s7 }
  0x1e   : > { %p389_p9 = pneg %p388_p13  ;;  %p395_p2 = por %p394_p1, %p393_p10 }
  0x20   : > { %p396_p3 = pnand %p395_p2, %p389_p9 }
  0x22   : > { %399 = shalt.err (!%p396_p3)
}
  0x23   : > { %334 = dma.hbm_to_vmem [thread:$0]  (!%p502_p8), %s498_s24, 128, %s500_s26, %s110_s28  }
  0x24   : > { %p568_p0 = scmp.lt.s32.totalorder %s434_s12, 3  ;;  %p569_p4 = scmp.ge.s32.totalorder %s434_s12, 1 }
  0x26   : > { %p127_p12 = pnand %p569_p4, %p568_p0 }
  0x27   : > { %s132_s16 = sand.u32 (!%p127_p12), 1, %s426_s10  }
  0x28   : > { %130 = sbr.rel (%p127_p12) target bundleno = 411 (0x19b), region = 28  ;;  %s321_s19 = sshll.u32 (!%p127_p12), %s132_s16, 3 }
  0x29   : > { %s133_s20 = scalar_lea.sflag (!%p127_p12), [#allocation3], %s132_s16  ;;  %s136_s21 = scalar_lea.vmem (!%p127_p12), [#allocation2], %s321_s19 }
  0x2f   : > { %417 = dma.done.wait (%p489_p7), %s133_s20, 128  }
  0x30   : > { %419 = vsyncadd (%p489_p7), %s133_s20, 4294967168  ;;  %v437_v0 = vmov 0.0   ;;  %v161_v1 = vld [vmem:[%s136_s21] sm:$0xff]  ;;  %vm168_vm0 = vcmask 1043456   ;;  %vm164_vm1 = vcmask 31744   ;;  %p156_p7 = scmp.lt.s32.totalorder %s472_s13, 1 }
  0x31   : > { %237 = vmatprep.mubr.f32.mxu0 %v437_v0  ;;  %v163_v2 = vcombine.high %v161_v1, %v161_v1  ;;  %v160_v3 = vld [vmem:[%s564_s1] sm:$0xff]  ;;  %vm247_vm2 = vcmask 7168  }
  0x32   : > { %s575_s13 = smov (!%p156_p7, %s472_s13), 1 }
  0x33   : > { %323 = vmatprep.subr.msk.mxu0 %vm168_vm0, %v163_v2  ;;  %s322_s18 = sshll.u32 %s575_s13, 3 }
  0x34   : > { %324 = vmatpush1.msk.msra.mxu0 %vm168_vm0, %v161_v1  ;;  %s159_s25 = scalar_lea.vmem %s565_s2, %s322_s18 }
  0x35   : > { %325 = vmatmul.mubr.msk.f32.vlgmr.msra.gmra.mrb[0].mxu0 %vm164_vm1, %v160_v3 }
 0x108   : > { %v239_v4 = vpop.f32.mrb[0].mxu0 }
 0x109   : > { %v241_v5 = vpop.f32.mrb[1].mxu0 }
 0x10a   : > { %v244_v6 = vmax.f32 %v239_v4, %v241_v5 }
 0x10c   : > { %245 = vmax.xlane.f32.xlu0 %v244_v6 }
 0x199   : > { %v246_v7 = vpop.xlane.xlu0 %245 }
 0x19a   : > { %248 = vst.msk [vmem:[%s159_s25] sm:$0xff] %vm247_vm2, %v246_v7 }
 0x19b PF: > { %p12_p8 = scmp.ge.s32.totalorder %s475_s14, 4   ;;  %s570_s9 = smov %s426_s10 }
 0x19c   : > { %s571_s10 = smov %s430_s11  ;;  %s572_s11 = smov %s485_s17 }
 0x19d   : > { %s573_s12 = smov %s475_s14  ;;  %14 = sbr.rel (!%p12_p8) target bundleno = 3 (0x3), region = 68 }
 0x1a4   :  { %268 = vsyncpa [#allocation3], 1 }
 0x1a5   :  { %270 = vsyncpa [#allocation3 + $0x1], 1 }

</bundles_post_ra>
